<compile_context>
chip_gen: v7x
topology: tpu7x:2x2x1
jax: 0.10.0
libtpu: 0.0.40
codegen_flags: <defaults>
</compile_context>

<pallas_src>
import jax
import jax.numpy as jnp
from jax.experimental import pallas as pl
from jax.experimental.pallas import tpu as pltpu


def _cdiv(a, b):
    return -(-a // b)


def _round_up(x, m):
    return _cdiv(x, m) * m


def _pick_tn(H):
    """Largest lane-dense output tile (multiple of 128, <= 768) that divides H."""
    if H % 128 != 0:
        return H
    for cand in (768, 640, 512, 384, 256, 128):
        if cand <= H and H % cand == 0:
            return cand
    return H


def _vmem_capacity_bytes():
    """Per-core VMEM capacity; conservative 64 MiB (v7x) if the query fails."""
    try:
        cap = int(pltpu.get_tpu_info().vmem_capacity_bytes)
        if cap > 0:
            return cap
    except Exception:
        pass
    return 64 << 20


def _vmem_estimate(tm, tn, in_dim, H, out_isz, w2_resident, w2_bufs):
    """Conservative VMEM bound (assumes >=2 buffers even where Buffered(1) is used)."""
    est = 2 * tm * in_dim * 2                    # x tiles (bf16)
    est += 2 * in_dim * H * 2                    # w1 (bf16, resident)
    est += 2 * H * 4                             # b1 (f32)
    if w2_resident:
        est += 2 * H * H * 2                     # w2 fully resident (bf16)
    else:
        est += max(w2_bufs, 2) * H * tn * 2      # streamed w2 column tiles (bf16)
    est += 2 * tn * 4                            # b2 tiles (f32)
    est += 2 * tm * tn * out_isz                 # output tiles
    est += tm * H * 2                            # SiLU scratch (bf16)
    est += 2 * tm * H * 4                        # f32 Linear1 / SiLU temporaries
    est += 2 * tm * tn * 4                       # f32 Linear2 temporary
    return est


def prepare_mlp_embedder_params(w1, b1, w2, b2):
    """One-time parameter prep (hoists the per-call f32->bf16 weight casts).

    Layout convention (already transposed w.r.t. torch.nn.Linear):
      w1: (in_dim, hidden) == in_layer.weight.T     b1: (hidden,)
      w2: (hidden, hidden) == out_layer.weight.T    b2: (hidden,)
    """
    return (jnp.asarray(w1, jnp.bfloat16),
            jnp.asarray(b1, jnp.float32).reshape(1, -1),
            jnp.asarray(w2, jnp.bfloat16),
            jnp.asarray(b2, jnp.float32).reshape(1, -1))


def _make_kernel(tn, w2_resident):
    def kernel(x_ref, w1_ref, b1_ref, w2_ref, b2_ref, o_ref, h_ref):
        j = pl.program_id(1)

        # SiLU(Linear1(x)) once per batch tile (and once per core on the split
        # hidden path); reused for every output-hidden tile j.
        @pl.when(j == 0)
        def _():
            h = jnp.dot(x_ref[...], w1_ref[...], preferred_element_type=jnp.float32)
            h = h + b1_ref[...]                   # (1, H) bias broadcasts over rows
            h = h * jax.nn.sigmoid(h)             # SiLU in f32 (exp goes to the EUP)
            h_ref[...] = h.astype(h_ref.dtype)    # bf16 for the second MXU pass

        if w2_resident:
            col = j * tn
            if tn % 128 == 0:
                col = pl.multiple_of(col, 128)
            w2_tile = w2_ref[:, pl.ds(col, tn)]   # slice the VMEM-resident w2
        else:
            w2_tile = w2_ref[...]                 # streamed (H, tn) column tile

        o = jnp.dot(h_ref[...], w2_tile, preferred_element_type=jnp.float32)
        o_ref[...] = (o + b2_ref[...]).astype(o_ref.dtype)

    return kernel


def mlp_embedder(x, w1, b1, w2, b2, *, tm=None, tn=None, out_dtype=None,
                 split_hidden_across_cores=None, w2_resident=None):
    """x: (B, in_dim) -> (B, H).  Prefer passing params from prepare_mlp_embedder_params."""
    B, in_dim = x.shape
    H = w1.shape[-1]
    if out_dtype is None:
        out_dtype = x.dtype          # pass bf16 here if the consumer accepts it
    out_isz = jnp.dtype(out_dtype).itemsize

    # Parameters: no-ops if prepare_mlp_embedder_params() was used (the per-call
    # f32->bf16 w2 cast otherwise costs more HBM traffic than the kernel itself).
    w1 = w1 if w1.dtype == jnp.bfloat16 else w1.astype(jnp.bfloat16)
    w2 = w2 if w2.dtype == jnp.bfloat16 else w2.astype(jnp.bfloat16)
    b1 = jnp.asarray(b1, jnp.float32).reshape(1, H)
    b2 = jnp.asarray(b2, jnp.float32).reshape(1, H)
    x_bf = x if x.dtype == jnp.bfloat16 else x.astype(jnp.bfloat16)

    # ---- tile selection ---------------------------------------------------
    if tn is None:
        tn = _pick_tn(H)
    if H % tn != 0:
        tn = H
    grid_j = H // tn

    if tm is None:
        # Minimize padding: e.g. B=260 -> tm=144 (pad to 288), not 512.
        tm = _round_up(_cdiv(B, _cdiv(B, 256)), 16)
    else:
        tm = _round_up(max(16, min(tm, _round_up(B, 16))), 16)
    B_pad = _round_up(B, tm)
    grid_i = B_pad // tm

    if B_pad != B:
        x_bf = jnp.pad(x_bf, ((0, B_pad - B), (0, 0)))

    vmem_cap = _vmem_capacity_bytes()

    # w2 residency: pays off only when (H, tn) tiles would otherwise be
    # re-streamed once per batch tile (grid_i > 1 and grid_j > 1).  Auto-enables
    # on v5e/v6e (128 MiB VMEM); stays off on v7x for flux sizes.
    if w2_resident is None:
        fits = _vmem_estimate(tm, tn, in_dim, H, out_isz, True, 2) <= vmem_cap - (16 << 20)
        w2_resident = grid_i > 1 and grid_j > 1 and fits
    else:
        w2_resident = bool(w2_resident)

    # Single-batch-tile case (flux B=1): split the output-hidden range over a
    # leading size-2 "parallel" grid axis so both v7x TensorCores work.  The
    # only cost on 1-TC chips is one extra (small) Linear1 recompute.
    can_split = (not w2_resident and grid_i == 1 and grid_j >= 2 and grid_j % 2 == 0)
    if split_hidden_across_cores is None:
        split = can_split and tm <= 128
    else:
        split = can_split and bool(split_hidden_across_cores)

    per_core_j = grid_j // 2 if split else grid_j
    w2_bufs = 1 if w2_resident else (3 if per_core_j >= 3 else 2)

    vmem_est = _vmem_estimate(tm, tn, in_dim, H, out_isz, w2_resident, w2_bufs)
    vmem_limit = int(min(max(32 << 20, int(1.25 * vmem_est) + (8 << 20)),
                         max(vmem_cap - (8 << 20), 32 << 20)))

    # ---- grid & index maps --------------------------------------------------
    half = grid_j // 2
    if split:
        grid = (2, half)
        x_map = lambda c, j: (0, 0)
        w_map = lambda c, j: (0, 0)
        col_map = lambda c, j: (0, c * half + j)
        out_map = col_map
    else:
        grid = (grid_i, grid_j)
        x_map = lambda i, j: (i, 0)
        w_map = lambda i, j: (0, 0)
        col_map = lambda i, j: (0, j)
        out_map = lambda i, j: (i, j)
    w2_map = w_map if w2_resident else col_map
    w2_block = (H, H) if w2_resident else (H, tn)

    w2_passes = 1 if (w2_resident or grid_j == 1) else grid_i
    cost = pl.CostEstimate(
        flops=2 * B_pad * (in_dim + H) * H,
        transcendentals=B_pad * H,
        bytes_accessed=int(x_bf.size * 2 + w1.size * 2 + w2.size * 2 * w2_passes
                           + b1.size * 4 + b2.size * 4 + B_pad * H * out_isz),
    )

    kernel = _make_kernel(tn, w2_resident)

    def _call(use_buffer_hints):
        def spec(shape, index_map, bufs=None):
            if use_buffer_hints and bufs is not None:
                return pl.BlockSpec(shape, index_map, pipeline_mode=pl.Buffered(bufs))
            return pl.BlockSpec(shape, index_map)

        in_specs = [
            spec((tm, in_dim), x_map, 1),      # x: constant across j
            spec((in_dim, H), w_map, 1),       # w1: fully resident
            spec((1, H), w_map, 1),            # b1: fully resident
            spec(w2_block, w2_map, w2_bufs),   # w2: streamed (deep) or resident
            spec((1, tn), col_map),            # b2 tile
        ]
        return pl.pallas_call(
            kernel,
            out_shape=jax.ShapeDtypeStruct((B_pad, H), out_dtype),
            grid_spec=pltpu.PrefetchScalarGridSpec(
                num_scalar_prefetch=0,
                grid=grid,
                in_specs=in_specs,
                out_specs=pl.BlockSpec((tm, tn), out_map),
                scratch_shapes=[pltpu.VMEM((tm, H), jnp.bfloat16)],  # SiLU(Linear1)
            ),
            compiler_params=pltpu.CompilerParams(
                dimension_semantics=("parallel", "arbitrary"),
                vmem_limit_bytes=vmem_limit,
            ),
            cost_estimate=cost,
        )(x_bf, w1, b1, w2, b2)

    out = None
    last_err = None
    # Retry without pipeline_mode hints if this jax build rejects Buffered(n).
    for use_hints in (True, False):
        try:
            out = _call(use_hints)
            break
        except Exception as e:  # noqa: BLE001
            last_err = e
    if out is None:
        raise last_err

    return out[:B] if B_pad != B else out


def mlp_embedder_ref(x, w1, b1, w2, b2):
    """Pure-JAX reference mirroring the kernel's bf16-operand / f32-accum math."""
    bf, f32 = jnp.bfloat16, jnp.float32
    h = jnp.dot(x.astype(bf), w1.astype(bf), preferred_element_type=f32) + b1
    h = h * jax.nn.sigmoid(h)
    o = jnp.dot(h.astype(bf), w2.astype(bf), preferred_element_type=f32) + b2
    return o.astype(x.dtype)


if __name__ == "__main__":
    key = jax.random.PRNGKey(0)

    def make_case(k, batch, in_dim, hidden):
        kx, kw1, kb1, kw2, kb2 = jax.random.split(k, 5)
        lim1 = 1.0 / (in_dim ** 0.5)
        lim2 = 1.0 / (hidden ** 0.5)
        x = jax.random.normal(kx, (batch, in_dim), dtype=jnp.float32)
        w1 = jax.random.uniform(kw1, (in_dim, hidden), jnp.float32, -lim1, lim1)
        b1 = jax.random.uniform(kb1, (hidden,), jnp.float32, -lim1, lim1)
        w2 = jax.random.uniform(kw2, (hidden, hidden), jnp.float32, -lim2, lim2)
        b2 = jax.random.uniform(kb2, (hidden,), jnp.float32, -lim2, lim2)
        return x, (w1, b1, w2, b2)

    def check(name, x, raw_params, **kw):
        params = prepare_mlp_embedder_params(*raw_params)  # one-time cast (hoisted)
        out = jax.block_until_ready(mlp_embedder(x, *params, **kw))
        ref = mlp_embedder_ref(x, *raw_params)
        assert out.shape == ref.shape, f"{name}: shape mismatch"
        assert jnp.allclose(out, ref, atol=5e-3, rtol=5e-3), f"{name}: mismatch vs reference"

    ks = jax.random.split(key, 4)

    # 0) canonical flux-style tiny batch, single tile each way.
    x, p = make_case(ks[0], batch=2, in_dim=32, hidden=256)
    check("tiny", x, p)

    # 1) single batch tile, several hidden tiles -> dual-core hidden-split path.
    x, p = make_case(ks[1], batch=4, in_dim=64, hidden=512)
    check("split", x, p, tn=128)

    # 2) multiple batch tiles, multiple hidden tiles -> VMEM-resident w2 path.
    x, p = make_case(ks[2], batch=272, in_dim=64, hidden=256)
    check("resident", x, p, tn=128)

    # 3) same shape, forced streaming w2 (v7x-style path with grid_i > 1).
    x, p = make_case(ks[3], batch=272, in_dim=64, hidden=256)
    check("streaming", x, p, tn=128, w2_resident=False)

    print("KERNEL_OK")
</pallas_src>

<mosaic_0001>
module attributes {stable_mosaic.version = 11 : i64} {
  func.func @kernel(%arg0: i32, %arg1: i32, %arg2: memref<16x32xbf16, #tpu.memory_space<vmem>>, %arg3: memref<32x256xbf16, #tpu.memory_space<vmem>>, %arg4: memref<1x256xf32, #tpu.memory_space<vmem>>, %arg5: memref<256x256xbf16, #tpu.memory_space<vmem>>, %arg6: memref<1x256xf32, #tpu.memory_space<vmem>>, %arg7: memref<16x256xf32, #tpu.memory_space<vmem>>, %arg8: memref<16x256xbf16, #tpu.memory_space<vmem>>) attributes {dimension_semantics = [#tpu.dimension_semantics<parallel>, #tpu.dimension_semantics<arbitrary>], iteration_bounds = array<i64: 1, 1>, scalar_prefetch = 0 : i64, scratch_operands = 1 : i64, tpu.core_type = #tpu.core_type<tc>, window_params = [{pipeline_mode = #tpu.pipeline_mode<synchronous>, transform_indices = @transform_0, window_bounds = array<i64: 16, 32>}, {pipeline_mode = #tpu.pipeline_mode<synchronous>, transform_indices = @transform_1, window_bounds = array<i64: 32, 256>}, {pipeline_mode = #tpu.pipeline_mode<synchronous>, transform_indices = @transform_2, window_bounds = array<i64: 1, 256>}, {pipeline_mode = #tpu.pipeline_mode<double_buffered>, transform_indices = @transform_3, window_bounds = array<i64: 256, 256>}, {transform_indices = @transform_4, window_bounds = array<i64: 1, 256>}, {transform_indices = @transform_5, window_bounds = array<i64: 16, 256>}]} {
    %c0_i32 = arith.constant 0 : i32
    %0 = arith.cmpi eq, %arg1, %c0_i32 : i32
    %1 = arith.extui %0 : i1 to i32
    %c0_i32_0 = arith.constant 0 : i32
    %2 = arith.cmpi ne, %1, %c0_i32_0 : i32
    scf.if %2 {
      %c0_8 = arith.constant 0 : index
      %c0_9 = arith.constant 0 : index
      %10 = vector.load %arg2[%c0_8, %c0_9] : memref<16x32xbf16, #tpu.memory_space<vmem>>, vector<16x32xbf16>
      %c0_10 = arith.constant 0 : index
      %c0_11 = arith.constant 0 : index
      %11 = vector.load %arg3[%c0_10, %c0_11] : memref<32x256xbf16, #tpu.memory_space<vmem>>, vector<32x256xbf16>
      %cst_12 = arith.constant dense<0.000000e+00> : vector<16x256xf32>
      %12 = tpu.matmul %10, %11, %cst_12 {dimension_numbers = #tpu.dot_dimension_numbers<[1], [0], [0], [1], [0, 0, 1, 1], [], []>} : vector<16x32xbf16>, vector<32x256xbf16>, vector<16x256xf32> -> vector<16x256xf32>
      %c0_13 = arith.constant 0 : index
      %c0_14 = arith.constant 0 : index
      %13 = vector.load %arg4[%c0_13, %c0_14] : memref<1x256xf32, #tpu.memory_space<vmem>>, vector<1x256xf32>
      %14 = vector.broadcast %13 : vector<1x256xf32> to vector<16x256xf32>
      %15 = arith.addf %12, %14 : vector<16x256xf32>
      %16 = arith.negf %15 : vector<16x256xf32>
      %17 = math.exp %16 : vector<16x256xf32>
      %cst_15 = arith.constant 1.000000e+00 : f32
      %18 = vector.broadcast %cst_15 : f32 to vector<16x256xf32>
      %19 = arith.addf %18, %17 : vector<16x256xf32>
      %20 = arith.divf %18, %19 : vector<16x256xf32>
      %21 = arith.mulf %15, %20 : vector<16x256xf32>
      %22 = arith.truncf %21 : vector<16x256xf32> to vector<16x256xbf16>
      %c0_16 = arith.constant 0 : index
      %c0_17 = arith.constant 0 : index
      %23 = vector.load %arg8[%c0_16, %c0_17] : memref<16x256xbf16, #tpu.memory_space<vmem>>, vector<16x256xbf16>
      tpu.vector_store %arg8[%c0_16, %c0_17], %22 {strides = array<i32>} : memref<16x256xbf16, #tpu.memory_space<vmem>>, vector<16x256xbf16>,
    } else {
    }
    %c0 = arith.constant 0 : index
    %c0_1 = arith.constant 0 : index
    %3 = vector.load %arg5[%c0, %c0_1] : memref<256x256xbf16, #tpu.memory_space<vmem>>, vector<256x256xbf16>
    %c0_2 = arith.constant 0 : index
    %c0_3 = arith.constant 0 : index
    %4 = vector.load %arg8[%c0_2, %c0_3] : memref<16x256xbf16, #tpu.memory_space<vmem>>, vector<16x256xbf16>
    %cst = arith.constant dense<0.000000e+00> : vector<16x256xf32>
    %5 = tpu.matmul %4, %3, %cst {dimension_numbers = #tpu.dot_dimension_numbers<[1], [0], [0], [1], [0, 0, 1, 1], [], []>} : vector<16x256xbf16>, vector<256x256xbf16>, vector<16x256xf32> -> vector<16x256xf32>
    %c0_4 = arith.constant 0 : index
    %c0_5 = arith.constant 0 : index
    %6 = vector.load %arg6[%c0_4, %c0_5] : memref<1x256xf32, #tpu.memory_space<vmem>>, vector<1x256xf32>
    %7 = vector.broadcast %6 : vector<1x256xf32> to vector<16x256xf32>
    %8 = arith.addf %5, %7 : vector<16x256xf32>
    %c0_6 = arith.constant 0 : index
    %c0_7 = arith.constant 0 : index
    %9 = vector.load %arg7[%c0_6, %c0_7] : memref<16x256xf32, #tpu.memory_space<vmem>>, vector<16x256xf32>
    tpu.vector_store %arg7[%c0_6, %c0_7], %8 {strides = array<i32>} : memref<16x256xf32, #tpu.memory_space<vmem>>, vector<16x256xf32>,
    return
  }
  func.func @transform_0(%arg0: i32, %arg1: i32) -> (i32, i32) {
    %c0_i32 = arith.constant 0 : i32
    %c0_i32_0 = arith.constant 0 : i32
    return %arg0, %c0_i32 : i32, i32
  }
  func.func @transform_1(%arg0: i32, %arg1: i32) -> (i32, i32) {
    %c0_i32 = arith.constant 0 : i32
    %c0_i32_0 = arith.constant 0 : i32
    %c0_i32_1 = arith.constant 0 : i32
    return %c0_i32, %c0_i32_0 : i32, i32
  }
  func.func @transform_2(%arg0: i32, %arg1: i32) -> (i32, i32) {
    %c0_i32 = arith.constant 0 : i32
    %c0_i32_0 = arith.constant 0 : i32
    %c0_i32_1 = arith.constant 0 : i32
    return %c0_i32, %c0_i32_0 : i32, i32
  }
  func.func @transform_3(%arg0: i32, %arg1: i32) -> (i32, i32) {
    %c0_i32 = arith.constant 0 : i32
    %c0_i32_0 = arith.constant 0 : i32
    return %c0_i32, %arg1 : i32, i32
  }
  func.func @transform_4(%arg0: i32, %arg1: i32) -> (i32, i32) {
    %c0_i32 = arith.constant 0 : i32
    %c0_i32_0 = arith.constant 0 : i32
    return %c0_i32, %arg1 : i32, i32
  }
  func.func @transform_5(%arg0: i32, %arg1: i32) -> (i32, i32) {
    %c0_i32 = arith.constant 0 : i32
    return %arg0, %arg1 : i32, i32
  }
}

module attributes {stable_mosaic.version = 11 : i64} {
  func.func @kernel(%arg0: i32, %arg1: i32, %arg2: memref<16x32xbf16, #tpu.memory_space<vmem>>, %arg3: memref<32x256xbf16, #tpu.memory_space<vmem>>, %arg4: memref<1x256xf32, #tpu.memory_space<vmem>>, %arg5: memref<256x256xbf16, #tpu.memory_space<vmem>>, %arg6: memref<1x256xf32, #tpu.memory_space<vmem>>, %arg7: memref<16x256xf32, #tpu.memory_space<vmem>>, %arg8: memref<16x256xbf16, #tpu.memory_space<vmem>>) attributes {dimension_semantics = [#tpu.dimension_semantics<parallel>, #tpu.dimension_semantics<arbitrary>], iteration_bounds = array<i64: 1, 1>, scalar_prefetch = 0 : i64, scratch_operands = 1 : i64, tpu.core_type = #tpu.core_type<tc>, window_params = [{transform_indices = @transform_0, window_bounds = array<i64: 16, 32>}, {pipeline_mode = #tpu.pipeline_mode<synchronous>, transform_indices = @transform_1, window_bounds = array<i64: 32, 256>}, {pipeline_mode = #tpu.pipeline_mode<synchronous>, transform_indices = @transform_2, window_bounds = array<i64: 1, 256>}, {transform_indices = @transform_3, window_bounds = array<i64: 256, 256>}, {transform_indices = @transform_4, window_bounds = array<i64: 1, 256>}, {transform_indices = @transform_5, window_bounds = array<i64: 16, 256>}]} {
    %c0_i32 = arith.constant 0 : i32
    %0 = arith.cmpi eq, %arg1, %c0_i32 : i32
    %1 = arith.extui %0 : i1 to i32
    %c0_i32_0 = arith.constant 0 : i32
    %2 = arith.cmpi ne, %1, %c0_i32_0 : i32
    scf.if %2 {
      %c0_8 = arith.constant 0 : index
      %c0_9 = arith.constant 0 : index
      %10 = vector.load %arg2[%c0_8, %c0_9] : memref<16x32xbf16, #tpu.memory_space<vmem>>, vector<16x32xbf16>
      %c0_10 = arith.constant 0 : index
      %c0_11 = arith.constant 0 : index
      %11 = vector.load %arg3[%c0_10, %c0_11] : memref<32x256xbf16, #tpu.memory_space<vmem>>, vector<32x256xbf16>
      %cst_12 = arith.constant dense<0.000000e+00> : vector<16x256xf32>
      %12 = tpu.matmul %10, %11, %cst_12 {dimension_numbers = #tpu.dot_dimension_numbers<[1], [0], [0], [1], [0, 0, 1, 1], [], []>} : vector<16x32xbf16>, vector<32x256xbf16>, vector<16x256xf32> -> vector<16x256xf32>
      %c0_13 = arith.constant 0 : index
      %c0_14 = arith.constant 0 : index
      %13 = vector.load %arg4[%c0_13, %c0_14] : memref<1x256xf32, #tpu.memory_space<vmem>>, vector<1x256xf32>
      %14 = vector.broadcast %13 : vector<1x256xf32> to vector<16x256xf32>
      %15 = arith.addf %12, %14 : vector<16x256xf32>
      %16 = arith.negf %15 : vector<16x256xf32>
      %17 = math.exp %16 : vector<16x256xf32>
      %cst_15 = arith.constant 1.000000e+00 : f32
      %18 = vector.broadcast %cst_15 : f32 to vector<16x256xf32>
      %19 = arith.addf %18, %17 : vector<16x256xf32>
      %20 = arith.divf %18, %19 : vector<16x256xf32>
      %21 = arith.mulf %15, %20 : vector<16x256xf32>
      %22 = arith.truncf %21 : vector<16x256xf32> to vector<16x256xbf16>
      %c0_16 = arith.constant 0 : index
      %c0_17 = arith.constant 0 : index
      %23 = vector.load %arg8[%c0_16, %c0_17] : memref<16x256xbf16, #tpu.memory_space<vmem>>, vector<16x256xbf16>
      tpu.vector_store %arg8[%c0_16, %c0_17], %22 {strides = array<i32>} : memref<16x256xbf16, #tpu.memory_space<vmem>>, vector<16x256xbf16>,
    } else {
    }
    %c0 = arith.constant 0 : index
    %c0_1 = arith.constant 0 : index
    %3 = vector.load %arg5[%c0, %c0_1] : memref<256x256xbf16, #tpu.memory_space<vmem>>, vector<256x256xbf16>
    %c0_2 = arith.constant 0 : index
    %c0_3 = arith.constant 0 : index
    %4 = vector.load %arg8[%c0_2, %c0_3] : memref<16x256xbf16, #tpu.memory_space<vmem>>, vector<16x256xbf16>
    %cst = arith.constant dense<0.000000e+00> : vector<16x256xf32>
    %5 = tpu.matmul %4, %3, %cst {dimension_numbers = #tpu.dot_dimension_numbers<[1], [0], [0], [1], [0, 0, 1, 1], [], []>} : vector<16x256xbf16>, vector<256x256xbf16>, vector<16x256xf32> -> vector<16x256xf32>
    %c0_4 = arith.constant 0 : index
    %c0_5 = arith.constant 0 : index
    %6 = vector.load %arg6[%c0_4, %c0_5] : memref<1x256xf32, #tpu.memory_space<vmem>>, vector<1x256xf32>
    %7 = vector.broadcast %6 : vector<1x256xf32> to vector<16x256xf32>
    %8 = arith.addf %5, %7 : vector<16x256xf32>
    %c0_6 = arith.constant 0 : index
    %c0_7 = arith.constant 0 : index
    %9 = vector.load %arg7[%c0_6, %c0_7] : memref<16x256xf32, #tpu.memory_space<vmem>>, vector<16x256xf32>
    tpu.vector_store %arg7[%c0_6, %c0_7], %8 {strides = array<i32>} : memref<16x256xf32, #tpu.memory_space<vmem>>, vector<16x256xf32>,
    return
  }
  func.func @transform_0(%arg0: i32, %arg1: i32) -> (i32, i32) {
    %c0_i32 = arith.constant 0 : i32
    %c0_i32_0 = arith.constant 0 : i32
    return %arg0, %c0_i32 : i32, i32
  }
  func.func @transform_1(%arg0: i32, %arg1: i32) -> (i32, i32) {
    %c0_i32 = arith.constant 0 : i32
    %c0_i32_0 = arith.constant 0 : i32
    %c0_i32_1 = arith.constant 0 : i32
    return %c0_i32, %c0_i32_0 : i32, i32
  }
  func.func @transform_2(%arg0: i32, %arg1: i32) -> (i32, i32) {
    %c0_i32 = arith.constant 0 : i32
    %c0_i32_0 = arith.constant 0 : i32
    %c0_i32_1 = arith.constant 0 : i32
    return %c0_i32, %c0_i32_0 : i32, i32
  }
  func.func @transform_3(%arg0: i32, %arg1: i32) -> (i32, i32) {
    %c0_i32 = arith.constant 0 : i32
    %c0_i32_0 = arith.constant 0 : i32
    return %c0_i32, %arg1 : i32, i32
  }
  func.func @transform_4(%arg0: i32, %arg1: i32) -> (i32, i32) {
    %c0_i32 = arith.constant 0 : i32
    %c0_i32_0 = arith.constant 0 : i32
    return %c0_i32, %arg1 : i32, i32
  }
  func.func @transform_5(%arg0: i32, %arg1: i32) -> (i32, i32) {
    %c0_i32 = arith.constant 0 : i32
    return %arg0, %arg1 : i32, i32
  }
}

</mosaic_0001>

<bundles_post_ra>
// kernel: tpu_custom_call.1
= control target key start
LH: loop header
LB: loop body
LE: loop exit
PB: predicated region body
PF: predicated region fallthrough
CT: control target
= control target key end

     0   :  { %10 = vsyncpa [#allocation4], 0  ;;  %s779_s0 = inlined_call_operand.hbm [shape: bf16[16,32], index: 0, kind: input, shape index: {}]   ;;  %s780_s1 = inlined_call_operand.hbm [shape: bf16[32,256], index: 1, kind: input, shape index: {}]   ;;  %s781_s2 = inlined_call_operand.vmem [shape: f32[1,256], index: 2, kind: input, shape index: {}]   ;;  %s782_s3 = inlined_call_operand.hbm [shape: bf16[256,256], index: 3, kind: input, shape index: {}]   ;;  %s783_s4 = inlined_call_operand.vmem [shape: f32[1,256], index: 4, kind: input, shape index: {}]   ;;  %s784_s5 = inlined_call_operand.hbm [shape: f32[16,256], index: 5, kind: output, shape index: {}]  }
   0x1   :  { %11 = vsyncpa [#allocation7], 0 }
   0x2   :  { %12 = vsyncpa [#allocation5], 0  ;;  %s678_s18 = smov [#allocation6]   ;;  %s584_s22 = scalar_lea.hbm %s780_s1, 512 }
   0x3   :  { %s30_s19 = sshll.u32 %s678_s18, 4  ;;  %p585_p0 = scmp.ne.s32.totalorder %s780_s1, %s584_s22  ;;  %s31_s19 = int_to_ptr.vmem [resolvable:$true] %s30_s19 }
   0x4   :  { %p588_p1 = scmp.lt.u32.totalorder %s584_s22, %s780_s1 }
   0x6   :  { %p590_p2 = pnand %p588_p1, %p585_p0 }
   0x8   :  { %593 = shalt.err (!%p590_p2)
}
   0x9   :  { %s594_s27 = scalar_lea.vmem %s31_s19, 512  ;;  %p599_p4 = scmp.lt.s32.totalorder %s31_s19, %s31_s19 }
   0xa   :  { %p595_p3 = scmp.ne.s32.totalorder %s31_s19, %s594_s27  ;;  %p600_p5 = scmp.lt.s32.totalorder %s594_s27, %s594_s27 }
   0xc   :  { %p601_p6 = por %p600_p5, %p599_p4 }
   0xe   :  { %p602_p7 = pnand %p601_p6, %p595_p3 }
  0x10   :  { %605 = shalt.err (!%p602_p7)
}
  0x11   :  { %s679_s28 = smov 128   ;;  %s680_s29 = smov 8  }
  0x12   :  { %36 = dma.hbm_to_vmem [thread:$0]  %s780_s1, 512, %s31_s19, [#allocation7], %s679_s28, %s679_s28, %s680_s29  }
  0x13   :  { %s681_s7 = smov [#allocation3]   ;;  %s606_s11 = scalar_lea.hbm %s779_s0, 128 }
  0x14   :  { %s18_s8 = sshll.u32 %s681_s7, 4  ;;  %p607_p8 = scmp.ne.s32.totalorder %s779_s0, %s606_s11  ;;  %s19_s8 = int_to_ptr.vmem [resolvable:$true] %s18_s8 }
  0x15   :  { %p610_p9 = scmp.lt.u32.totalorder %s606_s11, %s779_s0 }
  0x17   :  { %p612_p10 = pnand %p610_p9, %p607_p8 }
  0x19   :  { %615 = shalt.err (!%p612_p10)
}
  0x1a   :  { %s616_s16 = scalar_lea.vmem %s19_s8, 128  ;;  %p621_p12 = scmp.lt.s32.totalorder %s19_s8, %s19_s8 }
  0x1b   :  { %p617_p11 = scmp.ne.s32.totalorder %s19_s8, %s616_s16  ;;  %p622_p13 = scmp.lt.s32.totalorder %s616_s16, %s616_s16 }
  0x1d   :  { %p623_p0 = por %p622_p13, %p621_p12 }
  0x1f   :  { %p624_p1 = pnand %p623_p0, %p617_p11 }
  0x21   :  { %627 = shalt.err (!%p624_p1)
}
  0x22   :  { %s682_s1 = smov 64   ;;  %s683_s17 = smov 4  }
  0x23   :  { %24 = dma.hbm_to_vmem [thread:$0]  %s779_s0, 128, %s19_s8, [#allocation4], %s682_s1, %s682_s1, %s683_s17  }
  0x24   :  { %s684_s20 = smov [#allocation8]   ;;  %s628_s24 = scalar_lea.hbm %s782_s3, 4096 }
  0x25   :  { %s44_s21 = sshll.u32 %s684_s20, 4  ;;  %p629_p2 = scmp.ne.s32.totalorder %s782_s3, %s628_s24  ;;  %s45_s21 = int_to_ptr.vmem [resolvable:$true] %s44_s21 }
  0x26   :  { %p632_p3 = scmp.lt.u32.totalorder %s628_s24, %s782_s3 }
  0x28   :  { %p634_p4 = pnand %p632_p3, %p629_p2 }
  0x2a   :  { %637 = shalt.err (!%p634_p4)
}
  0x2b   :  { %s638_s6 = scalar_lea.vmem %s45_s21, 4096  ;;  %p643_p6 = scmp.lt.s32.totalorder %s45_s21, %s45_s21 }
  0x2c   :  { %p639_p5 = scmp.ne.s32.totalorder %s45_s21, %s638_s6  ;;  %p644_p7 = scmp.lt.s32.totalorder %s638_s6, %s638_s6 }
  0x2e   :  { %p645_p8 = por %p644_p7, %p643_p6 }
  0x30   :  { %p646_p9 = pnand %p645_p8, %p639_p5 }
  0x32   :  { %649 = shalt.err (!%p646_p9)
}
  0x33   :  { %50 = dma.hbm_to_vmem [thread:$0]  %s782_s3, 4096, %s45_s21, [#allocation7], %s679_s28, %s679_s28, %s680_s29  }
  0x34   :  { %672 = dma.done.wait [#allocation4], 128  }
  0x35   :  { %673 = vsyncadd [#allocation4], 4294967168 }
  0x36   :  { %674 = dma.done.wait [#allocation7], 4608  }
  0x37   :  { %675 = vsyncadd [#allocation7], 4294962688  ;;  %v685_v0 = vmov 0   ;;  %v513_v1 = vld [vmem:[#allocation6 + $0x4] ss:$8 sps:$4 sm:$0xff]   ;;  %v519_v8 = vld [vmem:[#allocation3] sm:$0xff]   ;;  %v75_v38 = vlaneseq }
  0x38   :  { %146 = vmatprep.mubr.bf16.mxu0 %v685_v0  ;;  %v515_v2 = vld [vmem:[#allocation6] ss:$8 sps:$4 sm:$0xff]   ;;  %114 = vmatprep.subr.bf16.mxu0 %v513_v1  ;;  %v516_v3 = vld [vmem:[#allocation6 + $0x14] ss:$8 sps:$4 sm:$0xff]   ;;  %v518_v4 = vld [vmem:[#allocation6 + $0x10] ss:$8 sps:$4 sm:$0xff]  }
  0x39   :  { %115 = vmatpush1.bf16.msra.mxu0 %v515_v2  ;;  %v520_v5 = vld [vmem:[#allocation8 + $0x4] ss:$8 sps:$4 sm:$0xff]   ;;  %v522_v6 = vld [vmem:[#allocation8] ss:$8 sps:$4 sm:$0xff]   ;;  %v523_v7 = vld [vmem:[#allocation8 + $0x14] ss:$8 sps:$4 sm:$0xff]  }
  0x3a   :  { %116 = vmatprep.subr.bf16.mxu0 %v516_v3  ;;  %395 = vmatprep.subr.bf16.mxu1 %v520_v5  ;;  %vm110_vm0 = vcmask 261120   ;;  %v525_v9 = vld [vmem:[#allocation8 + $0x10] ss:$8 sps:$4 sm:$0xff]   ;;  %v526_v10 = vld [vmem:[#allocation8 + $0x24] ss:$8 sps:$4 sm:$0xff]   ;;  %v76_v39 = vshrl.u32 %v75_v38, 7 }
  0x3b   :  { %396 = vmatpush1.bf16.msra.mxu1 %v522_v6  ;;  %v528_v11 = vld [vmem:[#allocation8 + $0x20] ss:$8 sps:$4 sm:$0xff]   ;;  %v529_v12 = vld [vmem:[#allocation8 + $0x34] ss:$8 sps:$4 sm:$0xff]   ;;  %v531_v13 = vld [vmem:[#allocation8 + $0x30] ss:$8 sps:$4 sm:$0xff]  }
  0x3c   :  { %397 = vmatprep.subr.bf16.mxu1 %v523_v7  ;;  %v532_v14 = vld [vmem:[#allocation8 + $0x44] ss:$8 sps:$4 sm:$0xff]   ;;  %v534_v15 = vld [vmem:[#allocation8 + $0x40] ss:$8 sps:$4 sm:$0xff]   ;;  %v535_v16 = vld [vmem:[#allocation8 + $0x54] ss:$8 sps:$4 sm:$0xff]  }
  0x3d   :  { %117 = vmatpush1.bf16.msra.mxu0 %v518_v4  ;;  %v537_v17 = vld [vmem:[#allocation8 + $0x50] ss:$8 sps:$4 sm:$0xff]   ;;  %v538_v18 = vld [vmem:[#allocation8 + $0x64] ss:$8 sps:$4 sm:$0xff]   ;;  %v540_v19 = vld [vmem:[#allocation8 + $0x60] ss:$8 sps:$4 sm:$0xff]  }
  0x3e   :  { %v541_v20 = vld [vmem:[#allocation8 + $0x74] ss:$8 sps:$4 sm:$0xff]   ;;  %v543_v21 = vld [vmem:[#allocation8 + $0x70] ss:$8 sps:$4 sm:$0xff]   ;;  %v544_v22 = vld [vmem:[#allocation8 + $0x84] ss:$8 sps:$4 sm:$0xff]  }
  0x3f   :  { %398 = vmatpush1.bf16.msra.mxu1 %v525_v9  ;;  %v546_v23 = vld [vmem:[#allocation8 + $0x80] ss:$8 sps:$4 sm:$0xff]   ;;  %v547_v24 = vld [vmem:[#allocation8 + $0x94] ss:$8 sps:$4 sm:$0xff]   ;;  %v549_v25 = vld [vmem:[#allocation8 + $0x90] ss:$8 sps:$4 sm:$0xff]  }
  0x40   :  { %465 = vmatmul.mubr.msk.bf16.vlgmr.msra.gmra.mrb[0].mxu0 %vm110_vm0, %v519_v8  ;;  %399 = vmatprep.subr.bf16.mxu1 %v526_v10  ;;  %v550_v26 = vld [vmem:[#allocation8 + $0xa4] ss:$8 sps:$4 sm:$0xff]   ;;  %v552_v27 = vld [vmem:[#allocation8 + $0xa0] ss:$8 sps:$4 sm:$0xff]   ;;  %v553_v28 = vld [vmem:[#allocation8 + $0xb4] ss:$8 sps:$4 sm:$0xff]  }
  0x41   :  { %v555_v29 = vld [vmem:[#allocation8 + $0xb0] ss:$8 sps:$4 sm:$0xff]   ;;  %v556_v30 = vld [vmem:[#allocation8 + $0xc4] ss:$8 sps:$4 sm:$0xff]   ;;  %v558_v31 = vld [vmem:[#allocation8 + $0xc0] ss:$8 sps:$4 sm:$0xff]  }
  0x42   :  { %v559_v32 = vld [vmem:[#allocation8 + $0xd4] ss:$8 sps:$4 sm:$0xff]   ;;  %v561_v33 = vld [vmem:[#allocation8 + $0xd0] ss:$8 sps:$4 sm:$0xff]   ;;  %v562_v34 = vld [vmem:[#allocation8 + $0xe4] ss:$8 sps:$4 sm:$0xff]  }
  0x43   :  { %400 = vmatpush1.bf16.msra.mxu1 %v528_v11  ;;  %v564_v35 = vld [vmem:[#allocation8 + $0xe0] ss:$8 sps:$4 sm:$0xff]   ;;  %v565_v36 = vld [vmem:[#allocation8 + $0xf4] ss:$8 sps:$4 sm:$0xff]   ;;  %v567_v37 = vld [vmem:[#allocation8 + $0xf0] ss:$8 sps:$4 sm:$0xff]  }
  0x44   :  { %401 = vmatprep.subr.bf16.mxu1 %v529_v12  ;;  %v77_v40 = vsub.s32 0, %v76_v39  ;;  %v73_v41 = vld [vmem:[%s781_s2] sm:$0x3]  ;;  %v81_v42 = vsub.s32 1, %v76_v39  ;;  %s686_s8 = smov [#allocation9]  }
  0x45   :  { %v223_v11 = vld [vmem:[%s783_s4] sm:$0x3]  ;;  %s447_s9 = sshll.u32 %s686_s8, 4  ;;  %s448_s9 = int_to_ptr.vmem [resolvable:$true] %s447_s9 }
  0x46   :  { %v78_v43 = vrot.slane %v73_v41, %v77_v40  ;;  %v82_v44 = vrot.slane %v73_v41, %v81_v42  ;;  %v228_v12 = vrot.slane %v223_v11, %v77_v40  ;;  %s650_s10 = scalar_lea.vmem %s448_s9, 512  ;;  %p655_p11 = scmp.lt.s32.totalorder %s448_s9, %s448_s9 }
  0x47   :  { %402 = vmatpush1.bf16.msra.mxu1 %v531_v13  ;;  %v232_v13 = vrot.slane %v223_v11, %v81_v42  ;;  %p651_p10 = scmp.ne.s32.totalorder %s448_s9, %s650_s10  ;;  %p656_p12 = scmp.lt.s32.totalorder %s650_s10, %s650_s10 }
  0x48   :  { %403 = vmatprep.subr.bf16.mxu1 %v532_v14 }
  0x49   :  { %p657_p13 = por %p656_p12, %p655_p11 }
  0x4b   :  { %404 = vmatpush1.bf16.msra.mxu1 %v534_v15  ;;  %p658_p0 = pnand %p657_p13, %p651_p10 }
  0x4c   :  { %405 = vmatprep.subr.bf16.mxu1 %v535_v16 }
  0x4f   :  { %406 = vmatpush1.bf16.msra.mxu1 %v537_v17 }
  0x50   :  { %407 = vmatprep.subr.bf16.mxu1 %v538_v18 }
  0x53   :  { %408 = vmatpush1.bf16.msra.mxu1 %v540_v19 }
  0x54   :  { %409 = vmatprep.subr.bf16.mxu1 %v541_v20 }
  0x57   :  { %410 = vmatpush1.bf16.msra.mxu1 %v543_v21 }
  0x58   :  { %411 = vmatprep.subr.bf16.mxu1 %v544_v22 }
  0x5b   :  { %412 = vmatpush1.bf16.msra.mxu1 %v546_v23 }
  0x5c   :  { %413 = vmatprep.subr.bf16.mxu1 %v547_v24 }
  0x5f   :  { %414 = vmatpush1.bf16.msra.mxu1 %v549_v25 }
  0x60   :  { %415 = vmatprep.subr.bf16.mxu1 %v550_v26 }
  0x63   :  { %416 = vmatpush1.bf16.msra.mxu1 %v552_v27 }
  0x64   :  { %417 = vmatprep.subr.bf16.mxu1 %v553_v28 }
  0x67   :  { %418 = vmatpush1.bf16.msra.mxu1 %v555_v29 }
  0x68   :  { %419 = vmatprep.subr.bf16.mxu1 %v556_v30 }
  0x6b   :  { %420 = vmatpush1.bf16.msra.mxu1 %v558_v31 }
  0x6c   :  { %421 = vmatprep.subr.bf16.mxu1 %v559_v32 }
  0x6f   :  { %422 = vmatpush1.bf16.msra.mxu1 %v561_v33 }
  0x70   :  { %423 = vmatprep.subr.bf16.mxu1 %v562_v34 }
  0x73   :  { %424 = vmatpush1.bf16.msra.mxu1 %v564_v35 }
  0x74   :  { %425 = vmatprep.subr.bf16.mxu1 %v565_v36 }
  0x77   :  { %426 = vmatpush1.bf16.msra.mxu1 %v567_v37 }
 0x113   :  { %v148_v45 = vpop.f32.mrb[0].mxu0 }
 0x114   :  { %v149_v46 = vadd.f32 %v148_v45, %v78_v43  ;;  %v150_v47 = vpop.f32.mrb[1].mxu0 }
 0x115   :  { %v151_v48 = vadd.f32 %v150_v47, %v82_v44  ;;  %v152_v49 = vpop.f32.mrb[2].mxu0 }
 0x116   :  { %v466_v50 = vmul.f32 -1.442695, %v149_v46  ;;  %v153_v51 = vadd.f32 %v152_v49, %v78_v43  ;;  %v154_v52 = vpop.f32.mrb[3].mxu0 }
 0x117   :  { %v467_v53 = vmul.f32 -1.442695, %v151_v48  ;;  %v155_v54 = vadd.f32 %v154_v52, %v82_v44 }
 0x118   :  { %568 = vpow2.f32 %v466_v50  ;;  %v468_v55 = vmul.f32 -1.442695, %v153_v51 }
 0x119   :  { %570 = vpow2.f32 %v467_v53  ;;  %v469_v56 = vmul.f32 -1.442695, %v155_v54 }
 0x11a   :  { %572 = vpow2.f32 %v468_v55 }
 0x11b   :  { %574 = vpow2.f32 %v469_v56 }
 0x122   :  { %v569_v57 = vpop.eup %568 }
 0x123   :  { %v571_v58 = vpop.eup %570  ;;  %v169_v59 = vadd.f32 1.0, %v569_v57 }
 0x124   :  { %v573_v60 = vpop.eup %572  ;;  %v170_v61 = vadd.f32 1.0, %v571_v58 }
 0x125   :  { %v575_v62 = vpop.eup %574  ;;  %576 = vrcp.f32 %v169_v59  ;;  %v171_v63 = vadd.f32 1.0, %v573_v60 }
 0x126   :  { %578 = vrcp.f32 %v170_v61  ;;  %v172_v0 = vadd.f32 1.0, %v575_v62 }
 0x127   :  { %580 = vrcp.f32 %v171_v63 }
 0x128   :  { %582 = vrcp.f32 %v172_v0 }
 0x12f   :  { %v577_v1 = vpop.eup %576 }
 0x130   :  { %v579_v2 = vpop.eup %578  ;;  %v181_v5 = vmul.f32 %v577_v1, %v149_v46 }
 0x131   :  { %v581_v3 = vpop.eup %580  ;;  %v182_v7 = vmul.f32 %v579_v2, %v151_v48 }
 0x132   :  { %v583_v4 = vpop.eup %582  ;;  %v183_v6 = vmul.f32 %v581_v3, %v153_v51 }
 0x133   :  { %v184_v8 = vmul.f32 %v583_v4, %v155_v54 }
 0x134   :  { %v185_v9 = vpack.c.bf16 %v183_v6, %v181_v5 }
 0x135   :  { %v186_v10 = vpack.c.bf16 %v184_v8, %v182_v7 }
 0x137   :  { %427 = vmatprep.mubr.bf16.mxu1 %v186_v10 }
 0x138   :  { %428 = vmatmul.mubr.bf16.vlgmr.msra.gmra.mrb[0].mxu1 %v185_v9 }
 0x20b   :  { %v429_v14 = vpop.f32.mrb[0].mxu1 }
 0x20c   :  { %v430_v15 = vadd.f32 %v429_v14, %v228_v12  ;;  %v431_v16 = vpop.f32.mrb[1].mxu1 }
 0x20d   :  { %v432_v17 = vadd.f32 %v431_v16, %v232_v13  ;;  %v433_v18 = vpop.f32.mrb[2].mxu1 }
 0x20e   :  { %438 = vst [vmem:[#allocation9] sm:$0xff] %v430_v15  ;;  %v434_v19 = vadd.f32 %v433_v18, %v228_v12  ;;  %v435_v20 = vpop.f32.mrb[3].mxu1 }
 0x20f   :  { %439 = vst [vmem:[#allocation9 + $0x8] sm:$0xff] %v432_v17  ;;  %v436_v21 = vadd.f32 %v435_v20, %v232_v13 }
 0x210   :  { %440 = vst [vmem:[#allocation9 + $0x10] sm:$0xff] %v434_v19 }
 0x211   :  { %441 = vst [vmem:[#allocation9 + $0x18] sm:$0xff] %v436_v21 }
 0x212   :  { %661 = shalt.err (!%p658_p0)
}
 0x213   :  { %s662_s12 = scalar_lea.hbm %s784_s5, 512 }
 0x214   :  { %p663_p1 = scmp.ne.s32.totalorder %s784_s5, %s662_s12  ;;  %p666_p2 = scmp.lt.u32.totalorder %s662_s12, %s784_s5 }
 0x216   :  { %p668_p3 = pnand %p666_p2, %p663_p1 }
 0x218   :  { %671 = shalt.err (!%p668_p3)
}
 0x219   :  { %s687_s1 = smov 256   ;;  %s688_s17 = smov 16  }
 0x21a   :  { %453 = dma.vmem_to_hbm [thread:$0]  %s448_s9, 512, %s784_s5, [#allocation5], %s687_s1, %s687_s1, %s688_s17  }
 0x21b   :  { %676 = dma.done.wait [#allocation5], 512  }
 0x21c   :  { %677 = vsyncadd [#allocation5], 4294966784 }
 0x21d   :  { %457 = vsyncpa [#allocation4], 1 }
 0x21e   :  { %458 = vsyncpa [#allocation7], 1 }
 0x21f   :  { %459 = vsyncpa [#allocation5], 1 }

// kernel: tpu_custom_call.1
= control target key start
LH: loop header
LB: loop body
LE: loop exit
PB: predicated region body
PF: predicated region fallthrough
CT: control target
= control target key end

     0   :  { %10 = vsyncpa [#allocation4], 0  ;;  %s779_s0 = inlined_call_operand.hbm [shape: bf16[16,32], index: 0, kind: input, shape index: {}]   ;;  %s780_s1 = inlined_call_operand.hbm [shape: bf16[32,256], index: 1, kind: input, shape index: {}]   ;;  %s781_s2 = inlined_call_operand.vmem [shape: f32[1,256], index: 2, kind: input, shape index: {}]   ;;  %s782_s3 = inlined_call_operand.hbm [shape: bf16[256,256], index: 3, kind: input, shape index: {}]   ;;  %s783_s4 = inlined_call_operand.vmem [shape: f32[1,256], index: 4, kind: input, shape index: {}]   ;;  %s784_s5 = inlined_call_operand.hbm [shape: f32[16,256], index: 5, kind: output, shape index: {}]  }
   0x1   :  { %11 = vsyncpa [#allocation7], 0 }
   0x2   :  { %12 = vsyncpa [#allocation5], 0  ;;  %s678_s18 = smov [#allocation6]   ;;  %s584_s22 = scalar_lea.hbm %s780_s1, 512 }
   0x3   :  { %s30_s19 = sshll.u32 %s678_s18, 4  ;;  %p585_p0 = scmp.ne.s32.totalorder %s780_s1, %s584_s22  ;;  %s31_s19 = int_to_ptr.vmem [resolvable:$true] %s30_s19 }
   0x4   :  { %p588_p1 = scmp.lt.u32.totalorder %s584_s22, %s780_s1 }
   0x6   :  { %p590_p2 = pnand %p588_p1, %p585_p0 }
   0x8   :  { %593 = shalt.err (!%p590_p2)
}
   0x9   :  { %s594_s27 = scalar_lea.vmem %s31_s19, 512  ;;  %p599_p4 = scmp.lt.s32.totalorder %s31_s19, %s31_s19 }
   0xa   :  { %p595_p3 = scmp.ne.s32.totalorder %s31_s19, %s594_s27  ;;  %p600_p5 = scmp.lt.s32.totalorder %s594_s27, %s594_s27 }
   0xc   :  { %p601_p6 = por %p600_p5, %p599_p4 }
   0xe   :  { %p602_p7 = pnand %p601_p6, %p595_p3 }
  0x10   :  { %605 = shalt.err (!%p602_p7)
}
  0x11   :  { %s679_s28 = smov 128   ;;  %s680_s29 = smov 8  }
  0x12   :  { %36 = dma.hbm_to_vmem [thread:$0]  %s780_s1, 512, %s31_s19, [#allocation7], %s679_s28, %s679_s28, %s680_s29  }
  0x13   :  { %s681_s7 = smov [#allocation3]   ;;  %s606_s11 = scalar_lea.hbm %s779_s0, 128 }
  0x14   :  { %s18_s8 = sshll.u32 %s681_s7, 4  ;;  %p607_p8 = scmp.ne.s32.totalorder %s779_s0, %s606_s11  ;;  %s19_s8 = int_to_ptr.vmem [resolvable:$true] %s18_s8 }
  0x15   :  { %p610_p9 = scmp.lt.u32.totalorder %s606_s11, %s779_s0 }
  0x17   :  { %p612_p10 = pnand %p610_p9, %p607_p8 }
  0x19   :  { %615 = shalt.err (!%p612_p10)
}
  0x1a   :  { %s616_s16 = scalar_lea.vmem %s19_s8, 128  ;;  %p621_p12 = scmp.lt.s32.totalorder %s19_s8, %s19_s8 }
  0x1b   :  { %p617_p11 = scmp.ne.s32.totalorder %s19_s8, %s616_s16  ;;  %p622_p13 = scmp.lt.s32.totalorder %s616_s16, %s616_s16 }
  0x1d   :  { %p623_p0 = por %p622_p13, %p621_p12 }
  0x1f   :  { %p624_p1 = pnand %p623_p0, %p617_p11 }
  0x21   :  { %627 = shalt.err (!%p624_p1)
}
  0x22   :  { %s682_s1 = smov 64   ;;  %s683_s17 = smov 4  }
  0x23   :  { %24 = dma.hbm_to_vmem [thread:$0]  %s779_s0, 128, %s19_s8, [#allocation4], %s682_s1, %s682_s1, %s683_s17  }
  0x24   :  { %s684_s20 = smov [#allocation8]   ;;  %s628_s24 = scalar_lea.hbm %s782_s3, 4096 }
  0x25   :  { %s44_s21 = sshll.u32 %s684_s20, 4  ;;  %p629_p2 = scmp.ne.s32.totalorder %s782_s3, %s628_s24  ;;  %s45_s21 = int_to_ptr.vmem [resolvable:$true] %s44_s21 }
  0x26   :  { %p632_p3 = scmp.lt.u32.totalorder %s628_s24, %s782_s3 }
  0x28   :  { %p634_p4 = pnand %p632_p3, %p629_p2 }
  0x2a   :  { %637 = shalt.err (!%p634_p4)
}
  0x2b   :  { %s638_s6 = scalar_lea.vmem %s45_s21, 4096  ;;  %p643_p6 = scmp.lt.s32.totalorder %s45_s21, %s45_s21 }
  0x2c   :  { %p639_p5 = scmp.ne.s32.totalorder %s45_s21, %s638_s6  ;;  %p644_p7 = scmp.lt.s32.totalorder %s638_s6, %s638_s6 }
  0x2e   :  { %p645_p8 = por %p644_p7, %p643_p6 }
  0x30   :  { %p646_p9 = pnand %p645_p8, %p639_p5 }
  0x32   :  { %649 = shalt.err (!%p646_p9)
}
  0x33   :  { %50 = dma.hbm_to_vmem [thread:$0]  %s782_s3, 4096, %s45_s21, [#allocation7], %s679_s28, %s679_s28, %s680_s29  }
  0x34   :  { %672 = dma.done.wait [#allocation4], 128  }
  0x35   :  { %673 = vsyncadd [#allocation4], 4294967168 }
  0x36   :  { %674 = dma.done.wait [#allocation7], 4608  }
  0x37   :  { %675 = vsyncadd [#allocation7], 4294962688  ;;  %v685_v0 = vmov 0   ;;  %v513_v1 = vld [vmem:[#allocation6 + $0x4] ss:$8 sps:$4 sm:$0xff]   ;;  %v519_v8 = vld [vmem:[#allocation3] sm:$0xff]   ;;  %v75_v38 = vlaneseq }
  0x38   :  { %146 = vmatprep.mubr.bf16.mxu0 %v685_v0  ;;  %v515_v2 = vld [vmem:[#allocation6] ss:$8 sps:$4 sm:$0xff]   ;;  %114 = vmatprep.subr.bf16.mxu0 %v513_v1  ;;  %v516_v3 = vld [vmem:[#allocation6 + $0x14] ss:$8 sps:$4 sm:$0xff]   ;;  %v518_v4 = vld [vmem:[#allocation6 + $0x10] ss:$8 sps:$4 sm:$0xff]  }
  0x39   :  { %115 = vmatpush1.bf16.msra.mxu0 %v515_v2  ;;  %v520_v5 = vld [vmem:[#allocation8 + $0x4] ss:$8 sps:$4 sm:$0xff]   ;;  %v522_v6 = vld [vmem:[#allocation8] ss:$8 sps:$4 sm:$0xff]   ;;  %v523_v7 = vld [vmem:[#allocation8 + $0x14] ss:$8 sps:$4 sm:$0xff]  }
  0x3a   :  { %116 = vmatprep.subr.bf16.mxu0 %v516_v3  ;;  %395 = vmatprep.subr.bf16.mxu1 %v520_v5  ;;  %vm110_vm0 = vcmask 261120   ;;  %v525_v9 = vld [vmem:[#allocation8 + $0x10] ss:$8 sps:$4 sm:$0xff]   ;;  %v526_v10 = vld [vmem:[#allocation8 + $0x24] ss:$8 sps:$4 sm:$0xff]   ;;  %v76_v39 = vshrl.u32 %v75_v38, 7 }
  0x3b   :  { %396 = vmatpush1.bf16.msra.mxu1 %v522_v6  ;;  %v528_v11 = vld [vmem:[#allocation8 + $0x20] ss:$8 sps:$4 sm:$0xff]   ;;  %v529_v12 = vld [vmem:[#allocation8 + $0x34] ss:$8 sps:$4 sm:$0xff]   ;;  %v531_v13 = vld [vmem:[#allocation8 + $0x30] ss:$8 sps:$4 sm:$0xff]  }
  0x3c   :  { %397 = vmatprep.subr.bf16.mxu1 %v523_v7  ;;  %v532_v14 = vld [vmem:[#allocation8 + $0x44] ss:$8 sps:$4 sm:$0xff]   ;;  %v534_v15 = vld [vmem:[#allocation8 + $0x40] ss:$8 sps:$4 sm:$0xff]   ;;  %v535_v16 = vld [vmem:[#allocation8 + $0x54] ss:$8 sps:$4 sm:$0xff]  }
  0x3d   :  { %117 = vmatpush1.bf16.msra.mxu0 %v518_v4  ;;  %v537_v17 = vld [vmem:[#allocation8 + $0x50] ss:$8 sps:$4 sm:$0xff]   ;;  %v538_v18 = vld [vmem:[#allocation8 + $0x64] ss:$8 sps:$4 sm:$0xff]   ;;  %v540_v19 = vld [vmem:[#allocation8 + $0x60] ss:$8 sps:$4 sm:$0xff]  }
  0x3e   :  { %v541_v20 = vld [vmem:[#allocation8 + $0x74] ss:$8 sps:$4 sm:$0xff]   ;;  %v543_v21 = vld [vmem:[#allocation8 + $0x70] ss:$8 sps:$4 sm:$0xff]   ;;  %v544_v22 = vld [vmem:[#allocation8 + $0x84] ss:$8 sps:$4 sm:$0xff]  }
  0x3f   :  { %398 = vmatpush1.bf16.msra.mxu1 %v525_v9  ;;  %v546_v23 = vld [vmem:[#allocation8 + $0x80] ss:$8 sps:$4 sm:$0xff]   ;;  %v547_v24 = vld [vmem:[#allocation8 + $0x94] ss:$8 sps:$4 sm:$0xff]   ;;  %v549_v25 = vld [vmem:[#allocation8 + $0x90] ss:$8 sps:$4 sm:$0xff]  }
  0x40   :  { %465 = vmatmul.mubr.msk.bf16.vlgmr.msra.gmra.mrb[0].mxu0 %vm110_vm0, %v519_v8  ;;  %399 = vmatprep.subr.bf16.mxu1 %v526_v10  ;;  %v550_v26 = vld [vmem:[#allocation8 + $0xa4] ss:$8 sps:$4 sm:$0xff]   ;;  %v552_v27 = vld [vmem:[#allocation8 + $0xa0] ss:$8 sps:$4 sm:$0xff]   ;;  %v553_v28 = vld [vmem:[#allocation8 + $0xb4] ss:$8 sps:$4 sm:$0xff]  }
  0x41   :  { %v555_v29 = vld [vmem:[#allocation8 + $0xb0] ss:$8 sps:$4 sm:$0xff]   ;;  %v556_v30 = vld [vmem:[#allocation8 + $0xc4] ss:$8 sps:$4 sm:$0xff]   ;;  %v558_v31 = vld [vmem:[#allocation8 + $0xc0] ss:$8 sps:$4 sm:$0xff]  }
  0x42   :  { %v559_v32 = vld [vmem:[#allocation8 + $0xd4] ss:$8 sps:$4 sm:$0xff]   ;;  %v561_v33 = vld [vmem:[#allocation8 + $0xd0] ss:$8 sps:$4 sm:$0xff]   ;;  %v562_v34 = vld [vmem:[#allocation8 + $0xe4] ss:$8 sps:$4 sm:$0xff]  }
  0x43   :  { %400 = vmatpush1.bf16.msra.mxu1 %v528_v11  ;;  %v564_v35 = vld [vmem:[#allocation8 + $0xe0] ss:$8 sps:$4 sm:$0xff]   ;;  %v565_v36 = vld [vmem:[#allocation8 + $0xf4] ss:$8 sps:$4 sm:$0xff]   ;;  %v567_v37 = vld [vmem:[#allocation8 + $0xf0] ss:$8 sps:$4 sm:$0xff]  }
  0x44   :  { %401 = vmatprep.subr.bf16.mxu1 %v529_v12  ;;  %v77_v40 = vsub.s32 0, %v76_v39  ;;  %v73_v41 = vld [vmem:[%s781_s2] sm:$0x3]  ;;  %v81_v42 = vsub.s32 1, %v76_v39  ;;  %s686_s8 = smov [#allocation9]  }
  0x45   :  { %v223_v11 = vld [vmem:[%s783_s4] sm:$0x3]  ;;  %s447_s9 = sshll.u32 %s686_s8, 4  ;;  %s448_s9 = int_to_ptr.vmem [resolvable:$true] %s447_s9 }
  0x46   :  { %v78_v43 = vrot.slane %v73_v41, %v77_v40  ;;  %v82_v44 = vrot.slane %v73_v41, %v81_v42  ;;  %v228_v12 = vrot.slane %v223_v11, %v77_v40  ;;  %s650_s10 = scalar_lea.vmem %s448_s9, 512  ;;  %p655_p11 = scmp.lt.s32.totalorder %s448_s9, %s448_s9 }
  0x47   :  { %402 = vmatpush1.bf16.msra.mxu1 %v531_v13  ;;  %v232_v13 = vrot.slane %v223_v11, %v81_v42  ;;  %p651_p10 = scmp.ne.s32.totalorder %s448_s9, %s650_s10  ;;  %p656_p12 = scmp.lt.s32.totalorder %s650_s10, %s650_s10 }
  0x48   :  { %403 = vmatprep.subr.bf16.mxu1 %v532_v14 }
  0x49   :  { %p657_p13 = por %p656_p12, %p655_p11 }
  0x4b   :  { %404 = vmatpush1.bf16.msra.mxu1 %v534_v15  ;;  %p658_p0 = pnand %p657_p13, %p651_p10 }
  0x4c   :  { %405 = vmatprep.subr.bf16.mxu1 %v535_v16 }
  0x4f   :  { %406 = vmatpush1.bf16.msra.mxu1 %v537_v17 }
  0x50   :  { %407 = vmatprep.subr.bf16.mxu1 %v538_v18 }
  0x53   :  { %408 = vmatpush1.bf16.msra.mxu1 %v540_v19 }
  0x54   :  { %409 = vmatprep.subr.bf16.mxu1 %v541_v20 }
  0x57   :  { %410 = vmatpush1.bf16.msra.mxu1 %v543_v21 }
  0x58   :  { %411 = vmatprep.subr.bf16.mxu1 %v544_v22 }
  0x5b   :  { %412 = vmatpush1.bf16.msra.mxu1 %v546_v23 }
  0x5c   :  { %413 = vmatprep.subr.bf16.mxu1 %v547_v24 }
  0x5f   :  { %414 = vmatpush1.bf16.msra.mxu1 %v549_v25 }
  0x60   :  { %415 = vmatprep.subr.bf16.mxu1 %v550_v26 }
  0x63   :  { %416 = vmatpush1.bf16.msra.mxu1 %v552_v27 }
  0x64   :  { %417 = vmatprep.subr.bf16.mxu1 %v553_v28 }
  0x67   :  { %418 = vmatpush1.bf16.msra.mxu1 %v555_v29 }
  0x68   :  { %419 = vmatprep.subr.bf16.mxu1 %v556_v30 }
  0x6b   :  { %420 = vmatpush1.bf16.msra.mxu1 %v558_v31 }
  0x6c   :  { %421 = vmatprep.subr.bf16.mxu1 %v559_v32 }
  0x6f   :  { %422 = vmatpush1.bf16.msra.mxu1 %v561_v33 }
  0x70   :  { %423 = vmatprep.subr.bf16.mxu1 %v562_v34 }
  0x73   :  { %424 = vmatpush1.bf16.msra.mxu1 %v564_v35 }
  0x74   :  { %425 = vmatprep.subr.bf16.mxu1 %v565_v36 }
  0x77   :  { %426 = vmatpush1.bf16.msra.mxu1 %v567_v37 }
 0x113   :  { %v148_v45 = vpop.f32.mrb[0].mxu0 }
 0x114   :  { %v149_v46 = vadd.f32 %v148_v45, %v78_v43  ;;  %v150_v47 = vpop.f32.mrb[1].mxu0 }
 0x115   :  { %v151_v48 = vadd.f32 %v150_v47, %v82_v44  ;;  %v152_v49 = vpop.f32.mrb[2].mxu0 }
 0x116   :  { %v466_v50 = vmul.f32 -1.442695, %v149_v46  ;;  %v153_v51 = vadd.f32 %v152_v49, %v78_v43  ;;  %v154_v52 = vpop.f32.mrb[3].mxu0 }
 0x117   :  { %v467_v53 = vmul.f32 -1.442695, %v151_v48  ;;  %v155_v54 = vadd.f32 %v154_v52, %v82_v44 }
 0x118   :  { %568 = vpow2.f32 %v466_v50  ;;  %v468_v55 = vmul.f32 -1.442695, %v153_v51 }
 0x119   :  { %570 = vpow2.f32 %v467_v53  ;;  %v469_v56 = vmul.f32 -1.442695, %v155_v54 }
 0x11a   :  { %572 = vpow2.f32 %v468_v55 }
 0x11b   :  { %574 = vpow2.f32 %v469_v56 }
 0x122   :  { %v569_v57 = vpop.eup %568 }
 0x123   :  { %v571_v58 = vpop.eup %570  ;;  %v169_v59 = vadd.f32 1.0, %v569_v57 }
 0x124   :  { %v573_v60 = vpop.eup %572  ;;  %v170_v61 = vadd.f32 1.0, %v571_v58 }
 0x125   :  { %v575_v62 = vpop.eup %574  ;;  %576 = vrcp.f32 %v169_v59  ;;  %v171_v63 = vadd.f32 1.0, %v573_v60 }
 0x126   :  { %578 = vrcp.f32 %v170_v61  ;;  %v172_v0 = vadd.f32 1.0, %v575_v62 }
 0x127   :  { %580 = vrcp.f32 %v171_v63 }
 0x128   :  { %582 = vrcp.f32 %v172_v0 }
 0x12f   :  { %v577_v1 = vpop.eup %576 }
 0x130   :  { %v579_v2 = vpop.eup %578  ;;  %v181_v5 = vmul.f32 %v577_v1, %v149_v46 }
 0x131   :  { %v581_v3 = vpop.eup %580  ;;  %v182_v7 = vmul.f32 %v579_v2, %v151_v48 }
 0x132   :  { %v583_v4 = vpop.eup %582  ;;  %v183_v6 = vmul.f32 %v581_v3, %v153_v51 }
 0x133   :  { %v184_v8 = vmul.f32 %v583_v4, %v155_v54 }
 0x134   :  { %v185_v9 = vpack.c.bf16 %v183_v6, %v181_v5 }
 0x135   :  { %v186_v10 = vpack.c.bf16 %v184_v8, %v182_v7 }
 0x137   :  { %427 = vmatprep.mubr.bf16.mxu1 %v186_v10 }
 0x138   :  { %428 = vmatmul.mubr.bf16.vlgmr.msra.gmra.mrb[0].mxu1 %v185_v9 }
 0x20b   :  { %v429_v14 = vpop.f32.mrb[0].mxu1 }
 0x20c   :  { %v430_v15 = vadd.f32 %v429_v14, %v228_v12  ;;  %v431_v16 = vpop.f32.mrb[1].mxu1 }
 0x20d   :  { %v432_v17 = vadd.f32 %v431_v16, %v232_v13  ;;  %v433_v18 = vpop.f32.mrb[2].mxu1 }
 0x20e   :  { %438 = vst [vmem:[#allocation9] sm:$0xff] %v430_v15  ;;  %v434_v19 = vadd.f32 %v433_v18, %v228_v12  ;;  %v435_v20 = vpop.f32.mrb[3].mxu1 }
 0x20f   :  { %439 = vst [vmem:[#allocation9 + $0x8] sm:$0xff] %v432_v17  ;;  %v436_v21 = vadd.f32 %v435_v20, %v232_v13 }
 0x210   :  { %440 = vst [vmem:[#allocation9 + $0x10] sm:$0xff] %v434_v19 }
 0x211   :  { %441 = vst [vmem:[#allocation9 + $0x18] sm:$0xff] %v436_v21 }
 0x212   :  { %661 = shalt.err (!%p658_p0)
}
 0x213   :  { %s662_s12 = scalar_lea.hbm %s784_s5, 512 }
 0x214   :  { %p663_p1 = scmp.ne.s32.totalorder %s784_s5, %s662_s12  ;;  %p666_p2 = scmp.lt.u32.totalorder %s662_s12, %s784_s5 }
 0x216   :  { %p668_p3 = pnand %p666_p2, %p663_p1 }
 0x218   :  { %671 = shalt.err (!%p668_p3)
}
 0x219   :  { %s687_s1 = smov 256   ;;  %s688_s17 = smov 16  }
 0x21a   :  { %453 = dma.vmem_to_hbm [thread:$0]  %s448_s9, 512, %s784_s5, [#allocation5], %s687_s1, %s687_s1, %s688_s17  }
 0x21b   :  { %676 = dma.done.wait [#allocation5], 512  }
 0x21c   :  { %677 = vsyncadd [#allocation5], 4294966784 }
 0x21d   :  { %457 = vsyncpa [#allocation4], 1 }
 0x21e   :  { %458 = vsyncpa [#allocation7], 1 }
 0x21f   :  { %459 = vsyncpa [#allocation5], 1 }

</bundles_post_ra>
